<compile_context>
chip_gen: v5e
topology: v5e:2x2
jax: 0.10.0
libtpu: 0.0.40
codegen_flags: <defaults>
</compile_context>

<pallas_src>
import functools

import jax
import jax.numpy as jnp
from jax.experimental import pallas as pl
from jax.experimental.pallas import tpu as pltpu

IGNORE_INDEX = -100


def _ce_kernel(logits_ref, labels_ref, sum_ref, cnt_ref, *, n_tokens, token_block):
    """One grid step: TN tokens x full vocab -> per-block loss-sum and count."""
    x = logits_ref[...].astype(jnp.float32)          # (TN, V)
    lbl = labels_ref[...]                            # (TN, 1) int32

    # Mask rows past the true token count: the last tile may be partial and
    # reads undefined data beyond the array. Those rows are treated as ignored
    # and any inf/NaN they would produce is discarded by the select below.
    row = (pl.program_id(0) * token_block
           + jax.lax.broadcasted_iota(jnp.int32, (token_block, 1), 0))
    valid = jnp.logical_and(lbl != IGNORE_INDEX, row < n_tokens)     # (TN, 1)

    # Numerically stable log-sum-exp over the vocab (lane) axis.
    m = jnp.max(x, axis=-1, keepdims=True)                            # (TN, 1)
    lse = m + jnp.log(jnp.sum(jnp.exp(x - m), axis=-1, keepdims=True))

    # Gather the target logit via a one-hot compare (no dynamic gather on TPU).
    col = jax.lax.broadcasted_iota(jnp.int32, x.shape, 1)             # (TN, V)
    tgt = jnp.sum(jnp.where(col == lbl, x, 0.0), axis=-1, keepdims=True)

    per_tok = jnp.where(valid, lse - tgt, 0.0)                        # (TN, 1)

    sum_ref[...] = jnp.sum(per_tok).reshape(1, 1)
    cnt_ref[...] = jnp.sum(valid.astype(jnp.float32)).reshape(1, 1)


def _choose_token_block(n_tokens, vocab, itemsize):
    """Largest multiple-of-8 token tile with ~4 MiB of logits per tile.

    Budget: 2x double-buffered input + ~4x elementwise temporaries of the tile
    stays well under v7x's 64 MiB VMEM (v5e/v6e have 128 MiB and more headroom).
    """
    target_tile_bytes = 4 * 1024 * 1024
    tn = target_tile_bytes // max(1, vocab * itemsize)
    tn = int(max(8, min(2048, (tn // 8) * 8)))
    n_cap = max(8, ((n_tokens + 7) // 8) * 8)   # no point exceeding token count
    return min(tn, n_cap)


@functools.partial(jax.jit, static_argnames=("token_block",))
def cross_entropy_loss(logits, labels, token_block=None):
    """logits: (..., V) float, labels: (...,) int.

    Returns mean cross-entropy over tokens whose label != -100 (matches
    torch.nn.CrossEntropyLoss(ignore_index=-100)). NaN if no valid tokens
    (same as torch).
    """
    V = logits.shape[-1]
    x = logits.reshape(-1, V)
    y = labels.reshape(-1, 1).astype(jnp.int32)
    N = x.shape[0]

    TN = token_block if token_block is not None else _choose_token_block(
        N, V, x.dtype.itemsize)
    G = (N + TN - 1) // TN

    kernel = functools.partial(_ce_kernel, n_tokens=N, token_block=TN)

    cost = pl.CostEstimate(
        flops=5 * N * V,
        transcendentals=N * V,
        bytes_accessed=N * V * x.dtype.itemsize + N * 4 + 2 * G * 4,
    )

    part_sum, part_cnt = pl.pallas_call(
        kernel,
        out_shape=(
            jax.ShapeDtypeStruct((G, 1), jnp.float32),
            jax.ShapeDtypeStruct((G, 1), jnp.float32),
        ),
        grid_spec=pltpu.PrefetchScalarGridSpec(
            num_scalar_prefetch=0,
            grid=(G,),
            in_specs=[
                pl.BlockSpec((TN, V), lambda i: (i, 0)),
                pl.BlockSpec((TN, 1), lambda i: (i, 0)),
            ],
            out_specs=[
                pl.BlockSpec((1, 1), lambda i: (i, 0)),
                pl.BlockSpec((1, 1), lambda i: (i, 0)),
            ],
        ),
        compiler_params=pltpu.CompilerParams(
            dimension_semantics=("parallel",),
            vmem_limit_bytes=48 * 1024 * 1024,
        ),
        cost_estimate=cost,
    )(x, y)

    # TODO(synk): for LLM-scale vocabularies (V >= ~32k) add a vocab grid axis
    # with an online (flash-style) logsumexp so tiles stay lane-dense and
    # VMEM-bounded on v7x; not needed at the vocab sizes exercised here.
    return jnp.sum(part_sum) / jnp.sum(part_cnt)


def _reference_loss(logits, labels):
    """Pure-JAX reference of nn.CrossEntropyLoss(ignore_index=-100)."""
    V = logits.shape[-1]
    x = logits.reshape(-1, V).astype(jnp.float32)
    y = labels.reshape(-1)
    lse = jax.scipy.special.logsumexp(x, axis=-1)
    tgt = jnp.take_along_axis(x, jnp.clip(y, 0)[:, None], axis=-1)[:, 0]
    valid = y != IGNORE_INDEX
    per_tok = jnp.where(valid, lse - tgt, 0.0)
    return jnp.sum(per_tok) / jnp.sum(valid.astype(jnp.float32))


if __name__ == "__main__":
    key = jax.random.PRNGKey(0)
    k_logits, k_labels, k_ignore = jax.random.split(key, 3)

    # Synthetic "tokenizer" vocab size (len(tokenizer)); deterministic in-script.
    VOCAB = 512
    B, S = 2, 8

    logits = jax.random.normal(k_logits, (B, S, VOCAB), dtype=jnp.float32)
    labels = jax.random.randint(k_labels, (B, S), 0, VOCAB, dtype=jnp.int32)
    # Sprinkle in ignored positions (like padded targets in T5 training).
    ignore_mask = jax.random.bernoulli(k_ignore, 0.25, (B, S))
    labels = jnp.where(ignore_mask, IGNORE_INDEX, labels)

    loss = cross_entropy_loss(logits, labels)
    jax.block_until_ready(loss)
    ref = _reference_loss(logits, labels)
    assert jnp.allclose(loss, ref, rtol=1e-5, atol=1e-5), (loss, ref)

    # Second case: N not a multiple of the token tile -> exercises the
    # in-kernel partial-tile masking and multiple grid steps.
    ka, kb, kc = jax.random.split(jax.random.PRNGKey(1), 3)
    B2, S2 = 3, 7                      # N = 21 tokens
    logits2 = jax.random.normal(ka, (B2, S2, VOCAB), dtype=jnp.float32)
    labels2 = jax.random.randint(kb, (B2, S2), 0, VOCAB, dtype=jnp.int32)
    labels2 = jnp.where(jax.random.bernoulli(kc, 0.25, (B2, S2)),
                        IGNORE_INDEX, labels2)
    loss2 = cross_entropy_loss(logits2, labels2, token_block=8)
    jax.block_until_ready(loss2)
    ref2 = _reference_loss(logits2, labels2)
    assert jnp.allclose(loss2, ref2, rtol=1e-5, atol=1e-5), (loss2, ref2)

    print("KERNEL_OK")
</pallas_src>

<mosaic_0001>
module attributes {stable_mosaic.version = 11 : i64} {
  func.func @_ce_kernel(%arg0: i32, %arg1: memref<16x512xf32, #tpu.memory_space<vmem>>, %arg2: memref<16x1xi32, #tpu.memory_space<vmem>>, %arg3: memref<1x1xf32, #tpu.memory_space<vmem>>, %arg4: memref<1x1xf32, #tpu.memory_space<vmem>>) attributes {dimension_semantics = [#tpu.dimension_semantics<parallel>], iteration_bounds = array<i64: 1>, scalar_prefetch = 0 : i64, scratch_operands = 0 : i64, tpu.core_type = #tpu.core_type<tc>, window_params = [{transform_indices = @transform_0, window_bounds = array<i64: 16, 512>}, {transform_indices = @transform_1, window_bounds = array<i64: 16, 1>}, {transform_indices = @transform_2, window_bounds = array<i64: 1, 1>}, {transform_indices = @transform_3, window_bounds = array<i64: 1, 1>}]} {
    %c0 = arith.constant 0 : index
    %c0_0 = arith.constant 0 : index
    %0 = vector.load %arg1[%c0, %c0_0] : memref<16x512xf32, #tpu.memory_space<vmem>>, vector<16x512xf32>
    %c0_1 = arith.constant 0 : index
    %c0_2 = arith.constant 0 : index
    %1 = vector.load %arg2[%c0_1, %c0_2] : memref<16x1xi32, #tpu.memory_space<vmem>>, vector<16x1xi32>
    %c16_i32 = arith.constant 16 : i32
    %2 = arith.muli %arg0, %c16_i32 : i32
    %3 = tpu.iota {dimensions = array<i32: 0>} : vector<16x1xi32>
    %4 = vector.broadcast %2 : i32 to vector<16x1xi32>
    %5 = arith.addi %4, %3 : vector<16x1xi32>
    %c-100_i32 = arith.constant -100 : i32
    %6 = vector.broadcast %c-100_i32 : i32 to vector<16x1xi32>
    %7 = arith.cmpi ne, %1, %6 : vector<16x1xi32>
    %c16_i32_3 = arith.constant 16 : i32
    %8 = vector.broadcast %c16_i32_3 : i32 to vector<16x1xi32>
    %9 = arith.cmpi slt, %5, %8 : vector<16x1xi32>
    %10 = arith.andi %7, %9 : vector<16x1xi1>
    %cst = arith.constant dense<0xFF800000> : vector<16xf32>
    %11 = vector.multi_reduction <maximumf>, %0, %cst [1] : vector<16x512xf32> to vector<16xf32>
    %12 = vector.shape_cast %11 : vector<16xf32> to vector<16x1xf32>
    %13 = vector.broadcast %12 : vector<16x1xf32> to vector<16x512xf32>
    %14 = arith.subf %0, %13 : vector<16x512xf32>
    %15 = math.exp %14 : vector<16x512xf32>
    %cst_4 = arith.constant dense<0.000000e+00> : vector<16xf32>
    %16 = vector.multi_reduction <add>, %15, %cst_4 [1] : vector<16x512xf32> to vector<16xf32>
    %17 = vector.shape_cast %16 : vector<16xf32> to vector<16x1xf32>
    %18 = math.log %17 : vector<16x1xf32>
    %19 = arith.addf %12, %18 : vector<16x1xf32>
    %20 = tpu.iota {dimensions = array<i32: 1>} : vector<16x512xi32>
    %21 = vector.broadcast %1 : vector<16x1xi32> to vector<16x512xi32>
    %22 = arith.cmpi eq, %20, %21 : vector<16x512xi32>
    %cst_5 = arith.constant 0.000000e+00 : f32
    %23 = vector.broadcast %cst_5 : f32 to vector<16x512xf32>
    %24 = arith.select %22, %0, %23 : vector<16x512xi1>, vector<16x512xf32>
    %cst_6 = arith.constant dense<0.000000e+00> : vector<16xf32>
    %25 = vector.multi_reduction <add>, %24, %cst_6 [1] : vector<16x512xf32> to vector<16xf32>
    %26 = vector.shape_cast %25 : vector<16xf32> to vector<16x1xf32>
    %27 = arith.subf %19, %26 : vector<16x1xf32>
    %cst_7 = arith.constant 0.000000e+00 : f32
    %28 = vector.broadcast %cst_7 : f32 to vector<16x1xf32>
    %29 = arith.select %10, %27, %28 : vector<16x1xi1>, vector<16x1xf32>
    %30 = vector.shape_cast %29 : vector<16x1xf32> to vector<1x16x1xf32>
    %cst_8 = arith.constant dense<0.000000e+00> : vector<1xf32>
    %31 = vector.multi_reduction <add>, %30, %cst_8 [1, 2] : vector<1x16x1xf32> to vector<1xf32>
    %32 = vector.shape_cast %31 : vector<1xf32> to vector<1x1x1xf32>
    %33 = vector.extract %32[0, 0, 0] : f32 from vector<1x1x1xf32>
    %34 = vector.broadcast %33 : f32 to vector<1x1xf32>
    %c0_9 = arith.constant 0 : index
    %c0_10 = arith.constant 0 : index
    %35 = vector.load %arg3[%c0_9, %c0_10] : memref<1x1xf32, #tpu.memory_space<vmem>>, vector<1x1xf32>
    tpu.vector_store %arg3[%c0_9, %c0_10], %34 {strides = array<i32>} : memref<1x1xf32, #tpu.memory_space<vmem>>, vector<1x1xf32>,
    %36 = arith.extui %10 : vector<16x1xi1> to vector<16x1xi32>
    %37 = arith.sitofp %36 : vector<16x1xi32> to vector<16x1xf32>
    %38 = vector.shape_cast %37 : vector<16x1xf32> to vector<1x16x1xf32>
    %cst_11 = arith.constant dense<0.000000e+00> : vector<1xf32>
    %39 = vector.multi_reduction <add>, %38, %cst_11 [1, 2] : vector<1x16x1xf32> to vector<1xf32>
    %40 = vector.shape_cast %39 : vector<1xf32> to vector<1x1x1xf32>
    %41 = vector.extract %40[0, 0, 0] : f32 from vector<1x1x1xf32>
    %42 = vector.broadcast %41 : f32 to vector<1x1xf32>
    %c0_12 = arith.constant 0 : index
    %c0_13 = arith.constant 0 : index
    %43 = vector.load %arg4[%c0_12, %c0_13] : memref<1x1xf32, #tpu.memory_space<vmem>>, vector<1x1xf32>
    tpu.vector_store %arg4[%c0_12, %c0_13], %42 {strides = array<i32>} : memref<1x1xf32, #tpu.memory_space<vmem>>, vector<1x1xf32>,
    return
  }
  func.func @transform_0(%arg0: i32) -> (i32, i32) {
    %c0_i32 = arith.constant 0 : i32
    %c0_i32_0 = arith.constant 0 : i32
    return %arg0, %c0_i32 : i32, i32
  }
  func.func @transform_1(%arg0: i32) -> (i32, i32) {
    %c0_i32 = arith.constant 0 : i32
    %c0_i32_0 = arith.constant 0 : i32
    return %arg0, %c0_i32 : i32, i32
  }
  func.func @transform_2(%arg0: i32) -> (i32, i32) {
    %c0_i32 = arith.constant 0 : i32
    %c0_i32_0 = arith.constant 0 : i32
    return %arg0, %c0_i32 : i32, i32
  }
  func.func @transform_3(%arg0: i32) -> (i32, i32) {
    %c0_i32 = arith.constant 0 : i32
    %c0_i32_0 = arith.constant 0 : i32
    return %arg0, %c0_i32 : i32, i32
  }
}

</mosaic_0001>

<bundles_post_ra>
// kernel: cross_entropy_loss.1
= control target key start
LH: loop header
LB: loop body
LE: loop exit
PB: predicated region body
PF: predicated region fallthrough
CT: control target
= control target key end

     0   :  { %9 = vsyncpa [#allocation3], 0  ;;  %s399_s0 = inlined_call_operand.hbm [shape: f32[16,512], index: 0, kind: input, shape index: {}]   ;;  %s400_s1 = inlined_call_operand.vmem [shape: s32[16,1], index: 1, kind: input, shape index: {}]   ;;  %s401_s2 = inlined_call_operand.hbm [shape: f32[1,1], index: 2, kind: output, shape index: {0}]   ;;  %s402_s3 = inlined_call_operand.hbm [shape: f32[1,1], index: 3, kind: output, shape index: {1}]  }
   0x1   :  { %10 = vsyncpa [#allocation4], 0 }
   0x2   :  { %11 = vsyncpa [#allocation7], 0  ;;  %s16_s14 = sshll.u32 %s399_s0, 4  ;;  %s325_s15 = smov [#allocation2]   ;;  %s17_s14 = int_to_ptr.hbm [resolvable:$true] %s16_s14 }
   0x3   :  { %s18_s16 = sshll.u32 %s325_s15, 4  ;;  %s326_s17 = smov 512   ;;  %s19_s16 = int_to_ptr.vmem [resolvable:$true] %s18_s16 }
   0x4   :  { %s327_s18 = smov 32  }
   0x5   :  { %24 = dma.hbm_to_vmem [thread:$0]  %s17_s14, 1024, %s19_s16, [#allocation3], %s326_s17, %s326_s17, %s327_s18  }
   0x6   :  { %319 = dma.done.wait [#allocation3], 1024  }
   0x7   :  { %320 = vsyncadd [#allocation3], 4294966272  ;;  %v328_v0 = vmov 0   ;;  %v31_v1 = vld [vmem:[#allocation2] sm:$0xff]  ;;  %v32_v2 = vld [vmem:[#allocation2 + $0x8] sm:$0xff]  ;;  %v104_v17 = vlaneseq  ;;  %vm145_vm10 = vcmask 7168  }
   0x8   :  { %225 = vset.pattern.permute.xlu1 %v328_v0  ;;  %226 = vset.pattern.permute.xlu0 %v328_v0  ;;  %v33_v3 = vld [vmem:[#allocation2 + $0x10] sm:$0xff]  ;;  %v34_v4 = vld [vmem:[#allocation2 + $0x18] sm:$0xff]  ;;  %v35_v7 = vld [vmem:[#allocation2 + $0x20] sm:$0xff]  ;;  %s186_s25 = sshll.u32 %s401_s2, 4  ;;  %s331_s26 = smov [#allocation6]   ;;  %vm159_vm11 = vcmask 0   ;;  %s187_s25 = int_to_ptr.hbm [resolvable:$true] %s186_s25 }
   0x9   :  { %v54_v5 = vmax.f32 %v31_v1, %v33_v3  ;;  %v55_v6 = vmax.f32 %v32_v2, %v34_v4  ;;  %v358_v8 = vld [vmem:[%s400_s1] sm:$0xff]  ;;  %v36_v9 = vld [vmem:[#allocation2 + $0x28] sm:$0xff]  ;;  %v37_v10 = vld [vmem:[#allocation2 + $0x30] sm:$0xff]  ;;  %v105_v18 = vand.u32 127, %v104_v17  ;;  %s195_s27 = sshll.u32 %s331_s26, 4  ;;  %s197_s30 = sshll.u32 %s402_s3, 4  ;;  %s196_s27 = int_to_ptr.vmem [resolvable:$true] %s195_s27  ;;  %s198_s30 = int_to_ptr.hbm [resolvable:$true] %s197_s30 }
   0xa   :  { %v360_v11 = vld [vmem:[#allocation2 + $0x38] sm:$0xff]  ;;  %110 = vperm.xlu1 %225, %v358_v8   ;;  %v59_v13 = vmax.f32 %v35_v7, %v37_v10  ;;  %v367_v15 = vld [vmem:[%s400_s1 + $0x8] sm:$0xff]  ;;  %vm48_vm8 = vcmp.ne.s32.totalorder %v358_v8, 4294967196  ;;  %s330_s1 = smov [#allocation5]  }
   0xb   :  { %v56_v12 = vmax.f32 %v54_v5, %v55_v6  ;;  %v60_v14 = vmax.f32 %v36_v9, %v360_v11  ;;  %v106_v19 = vadd.s32 128, %v105_v18  ;;  %v107_v20 = vadd.s32 256, %v105_v18  ;;  %s184_s22 = sshll.u32 %s330_s1, 4  ;;  %s185_s22 = int_to_ptr.vmem [resolvable:$true] %s184_s22 }
   0xc   :  { %v108_v21 = vadd.s32 384, %v105_v18  ;;  %v329_v6 = vmov 0.0   ;;  %vm49_vm9 = vcmp.ne.s32.totalorder %v367_v15, 4294967196 }
   0xd   :  { %57 = vmax.xlane.f32.xlu0 %v56_v12  ;;  %v61_v16 = vmax.f32 %v59_v13, %v60_v14 }
  0x12   :  { %113 = vperm.xlu1 %225, %v367_v15  }
  0x15   :  { %62 = vmax.xlane.f32.xlu0 %v61_v16 }
  0x7c   :  { %v111_v22 = vpop.permute.xlu1 %110 }
  0x7d   :  { %vm115_vm0 = vcmp.eq.s32.totalorder %v105_v18, %v111_v22  ;;  %vm116_vm1 = vcmp.eq.s32.totalorder %v106_v19, %v111_v22  ;;  %vm117_vm2 = vcmp.eq.s32.totalorder %v107_v20, %v111_v22  ;;  %vm118_vm3 = vcmp.eq.s32.totalorder %v108_v21, %v111_v22 }
  0x7e   :  { %v123_v23 = vsel %vm115_vm0, %v31_v1, 0.0  ;;  %v124_v24 = vsel %vm116_vm1, %v32_v2, 0.0  ;;  %v125_v25 = vsel %vm117_vm2, %v33_v3, 0.0  ;;  %v126_v28 = vsel %vm118_vm3, %v34_v4, 0.0 }
  0x7f   :  { %v131_v26 = vadd.f32 %v124_v24, %v123_v23 }
  0x80   :  { %v370_v27 = vpop.xlane.xlu0 %57 }
  0x81   :  { %v64_v29 = vsub.f32 %v31_v1, %v370_v27  ;;  %v65_v30 = vsub.f32 %v32_v2, %v370_v27  ;;  %v66_v31 = vsub.f32 %v33_v3, %v370_v27  ;;  %v67_v32 = vsub.f32 %v34_v4, %v370_v27 }
  0x82   :  { %v132_v33 = vadd.f32 %v131_v26, %v125_v25 }
  0x83   :  { %v72_v34 = vmul.f32 1.442695, %v64_v29  ;;  %v74_v35 = vmul.f32 1.442695, %v65_v30  ;;  %v76_v36 = vmul.f32 1.442695, %v66_v31 }
  0x84   :  { %v114_v37 = vpop.permute.xlu1 %113  ;;  %v78_v38 = vmul.f32 1.442695, %v67_v32  ;;  %v133_v39 = vadd.f32 %v132_v33, %v126_v28 }
  0x85   :  { %227 = vpow2.f32 %v72_v34  ;;  %vm119_vm4 = vcmp.eq.s32.totalorder %v105_v18, %v114_v37  ;;  %vm120_vm5 = vcmp.eq.s32.totalorder %v106_v19, %v114_v37  ;;  %vm121_vm6 = vcmp.eq.s32.totalorder %v107_v20, %v114_v37 }
  0x86   :  { %229 = vpow2.f32 %v74_v35  ;;  %vm122_vm7 = vcmp.eq.s32.totalorder %v108_v21, %v114_v37  ;;  %v127_v40 = vsel %vm119_vm4, %v35_v7, 0.0  ;;  %v128_v41 = vsel %vm120_vm5, %v36_v9, 0.0  ;;  %134 = vadd.xlane.f32.xlu0 %v133_v39 }
  0x87   :  { %v129_v42 = vsel %vm121_vm6, %v37_v10, 0.0  ;;  %v136_v43 = vadd.f32 %v128_v41, %v127_v40  ;;  %231 = vpow2.f32 %v76_v36  ;;  %v130_v48 = vsel %vm122_vm7, %v360_v11, 0.0 }
  0x88   :  { %v63_v44 = vpop.xlane.xlu0 %62  ;;  %233 = vpow2.f32 %v78_v38 }
  0x89   :  { %v68_v45 = vsub.f32 %v35_v7, %v63_v44  ;;  %v69_v46 = vsub.f32 %v36_v9, %v63_v44  ;;  %v70_v47 = vsub.f32 %v37_v10, %v63_v44  ;;  %v71_v49 = vsub.f32 %v360_v11, %v63_v44 }
  0x8a   :  { %v137_v50 = vadd.f32 %v136_v43, %v129_v42  ;;  %v212_v7 = vsel %vm48_vm8, 1.0, %v329_v6  ;;  %v213_v9 = vsel %vm49_vm9, 1.0, %v329_v6 }
  0x8b   :  { %v228_v51 = vpop.eup %227  ;;  %v80_v52 = vmul.f32 1.442695, %v68_v45  ;;  %v82_v53 = vmul.f32 1.442695, %v69_v46  ;;  %v84_v55 = vmul.f32 1.442695, %v70_v47 }
  0x8c   :  { %v230_v54 = vpop.eup %229  ;;  %v138_v56 = vadd.f32 %v137_v50, %v130_v48  ;;  %v86_v59 = vmul.f32 1.442695, %v71_v49  ;;  %v165_v10 = vsel %vm145_vm10, %v212_v7, 0.0  ;;  %v166_v11 = vsel %vm145_vm10, %v213_v9, 0.0 }
  0x8d   :  { %235 = vpow2.f32 %v80_v52  ;;  %v88_v57 = vadd.f32 %v230_v54, %v228_v51  ;;  %v232_v58 = vpop.eup %231  ;;  %v167_v12 = vadd.f32 %v166_v11, %v165_v10 }
  0x8e   :  { %237 = vpow2.f32 %v82_v53  ;;  %139 = vadd.xlane.f32.xlu1 %v138_v56  ;;  %v234_v61 = vpop.eup %233 }
  0x8f   :  { %v89_v60 = vadd.f32 %v232_v58, %v88_v57  ;;  %239 = vpow2.f32 %v84_v55  ;;  %168 = vadd.xlane.f32.xlu0 %v167_v12 }
  0x90   :  { %241 = vpow2.f32 %v86_v59 }
  0x91   :  { %v90_v62 = vadd.f32 %v234_v61, %v89_v60 }
  0x93   :  { %v236_v63 = vpop.eup %235  ;;  %91 = vadd.xlane.f32.xlu2 %v90_v62 }
  0x94   :  { %v238_v0 = vpop.eup %237 }
  0x95   :  { %v93_v1 = vadd.f32 %v238_v0, %v236_v63  ;;  %v240_v2 = vpop.eup %239 }
  0x96   :  { %v242_v4 = vpop.eup %241 }
  0x97   :  { %v94_v3 = vadd.f32 %v240_v2, %v93_v1 }
  0x99   :  { %v95_v5 = vadd.f32 %v242_v4, %v94_v3 }
  0x9b   :  { %96 = vadd.xlane.f32.xlu2 %v95_v5 }
  0xf9   :  { %v135_v20 = vpop.xlane.xlu0 %134 }
 0x101   :  { %v140_v24 = vpop.xlane.xlu1 %139 }
 0x106   :  { %v92_v13 = vpop.xlane.xlu2 %91 }
 0x107   :  { %243 = vlog2.f32 %v92_v13 }
 0x10d   :  { %v244_v14 = vpop.eup %243 }
 0x10e   :  { %v99_v16 = vmul.f32 0.6931472, %v244_v14  ;;  %v97_v17 = vpop.xlane.xlu2 %96 }
 0x10f   :  { %245 = vlog2.f32 %v97_v17 }
 0x110   :  { %v102_v18 = vadd.f32 %v99_v16, %v370_v27  ;;  %v169_v27 = vpop.xlane.xlu0 %168 }
 0x111   :  { %v170_v32 = vrot.slane %v169_v27, 4 }
 0x112   :  { %v141_v21 = vsub.f32 %v102_v18, %v135_v20 }
 0x113   :  { %v171_v33 = vadd.f32 %v170_v32, %v169_v27 }
 0x114   :  { %v143_v25 = vsel %vm48_vm8, %v141_v21, 0.0 }
 0x115   :  { %v246_v19 = vpop.eup %245  ;;  %v146_v29 = vsel %vm145_vm10, %v143_v25, 0.0  ;;  %v172_v34 = vrot.slane %v171_v33, 2 }
 0x116   :  { %v101_v22 = vmul.f32 0.6931472, %v246_v19 }
 0x117   :  { %v173_v38 = vadd.f32 %v172_v34, %v171_v33 }
 0x118   :  { %v103_v23 = vadd.f32 %v101_v22, %v63_v44 }
 0x119   :  { %v174_v40 = vrot.slane %v173_v38, 1 }
 0x11a   :  { %v142_v26 = vsub.f32 %v103_v23, %v140_v24 }
 0x11b   :  { %v175_v42 = vadd.f32 %v174_v40, %v173_v38 }
 0x11c   :  { %v144_v28 = vsel %vm49_vm9, %v142_v26, 0.0 }
 0x11d   :  { %v147_v30 = vsel %vm145_vm10, %v144_v28, 0.0 }
 0x11e   :  { %v148_v31 = vadd.f32 %v147_v30, %v146_v29 }
 0x120   :  { %149 = vadd.xlane.f32.xlu2 %v148_v31 }
 0x193   :  { %v150_v35 = vpop.xlane.xlu2 %149 }
 0x194   :  { %v151_v36 = vrot.slane %v150_v35, 4 }
 0x196   :  { %v152_v37 = vadd.f32 %v151_v36, %v150_v35 }
 0x198   :  { %v153_v8 = vrot.slane %v152_v37, 2 }
 0x19a   :  { %v154_v39 = vadd.f32 %v153_v8, %v152_v37 }
 0x19c   :  { %v155_v41 = vrot.slane %v154_v39, 1 }
 0x19e   :  { %v156_v15 = vadd.f32 %v155_v41, %v154_v39 }
 0x1a0   :  { %214 = vpush %v156_v15 }
 0x1a1   :  { %216 = vpush %v175_v42 }
 0x1d1   :  { %s215_s4 = spop %214 }
 0x1d2   :  { %v158_v43 = vstv %s215_s4  ;;  %s217_s5 = spop %216 }
 0x1d3   :  { %160 = vst.msk [vmem:[#allocation5] sm:$0x1] %vm159_vm11, %v158_v43  ;;  %v177_v44 = vstv %s217_s5 }
 0x1d4   :  { %178 = vst.msk [vmem:[#allocation6] sm:$0x1] %vm159_vm11, %v177_v44  ;;  %189 = dma.vmem_to_hbm [thread:$0]  %s185_s22, 16, %s187_s25, [#allocation4]  }
 0x1d5   :  { %200 = dma.vmem_to_hbm [thread:$0]  %s196_s27, 16, %s198_s30, [#allocation7]  }
 0x1d6   :  { %321 = dma.done.wait [#allocation4], 16  }
 0x1d7   :  { %322 = vsyncadd [#allocation4], 4294967280 }
 0x1d8   :  { %323 = dma.done.wait [#allocation7], 16  }
 0x1d9   :  { %324 = vsyncadd [#allocation7], 4294967280 }
 0x1da   :  { %209 = vsyncpa [#allocation3], 1 }
 0x1db   :  { %210 = vsyncpa [#allocation4], 1 }
 0x1dc   :  { %211 = vsyncpa [#allocation7], 1 }

</bundles_post_ra>
